<compile_context>
chip_gen: v6e
topology: v6e:2x2x1
jax: 0.10.0
libtpu: 0.0.40
codegen_flags: <defaults>
</compile_context>

<pallas_src>
import functools

import jax
import jax.numpy as jnp
from jax.experimental import pallas as pl
from jax.experimental.pallas import tpu as pltpu

IN_FEATURES = 10
OUT_FEATURES = 5


def linear_kernel(w_ref, b_ref, xt_ref, ot_ref):
    # w_ref:  (5, 10)   weight in PyTorch (out, in) layout — no transpose needed
    # b_ref:  (5, 1)    bias as a column, lane-broadcast against the output
    # xt_ref: (10, TB)  x^T tile — batch sits on the 128-lane axis
    # ot_ref: (5, TB)   out^T tile — lane-dense, unmasked stores
    acc = jnp.dot(
        w_ref[...],
        xt_ref[...],
        preferred_element_type=jnp.float32,
        precision=jax.lax.Precision.HIGHEST,
    )
    ot_ref[...] = (acc + b_ref[...]).astype(ot_ref.dtype)


def _round_up(n, m):
    return ((n + m - 1) // m) * m


@functools.partial(jax.jit, static_argnames=("block_b",))
def simple_model_forward(x, weight, bias, *, block_b=32768):
    """x: (B, 10) f32; weight: (5, 10) f32; bias: (5,) f32 -> (B, 5) f32."""
    B = x.shape[0]

    # Balanced batch tiling: pick the block count first (>= 2 for v7x megacore
    # when there is enough batch), then size each tile as a 128-multiple just
    # large enough to cover B. Padding waste stays <= ~128 rows per block.
    b128 = _round_up(max(B, 1), 128)
    num_blocks = max(1, -(-b128 // block_b))        # ceil(b128 / block_b)
    if b128 >= 256:
        num_blocks = max(num_blocks, 2)             # shard across 2 TCs on v7x
    tb = _round_up(-(-b128 // num_blocks), 128)     # per-block tile, mult of 128
    B_pad = tb * num_blocks

    # Wrapper-side layout plumbing (fused into one pass under jit):
    # pad batch, transpose to (10, B_pad) so batch lands on the lane axis.
    x_pad = jnp.pad(x, ((0, B_pad - B), (0, 0)))
    xt = x_pad.T                                    # (10, B_pad)
    b_col = bias.reshape(OUT_FEATURES, 1)           # (5, 1)

    out_t = pl.pallas_call(
        linear_kernel,
        out_shape=jax.ShapeDtypeStruct((OUT_FEATURES, B_pad), x.dtype),
        grid=(num_blocks,),
        in_specs=[
            pl.BlockSpec((OUT_FEATURES, IN_FEATURES), lambda i: (0, 0)),
            pl.BlockSpec((OUT_FEATURES, 1), lambda i: (0, 0)),
            pl.BlockSpec((IN_FEATURES, tb), lambda i: (0, i)),
        ],
        out_specs=pl.BlockSpec((OUT_FEATURES, tb), lambda i: (0, i)),
        compiler_params=pltpu.CompilerParams(
            dimension_semantics=("parallel",),
        ),
    )(weight, b_col, xt)

    # Back to the PyTorch layout: (B, 5).
    return out_t[:, :B].T


def init_params(key):
    # Deterministic init mimicking PyTorch nn.Linear default:
    # U(-1/sqrt(in_features), 1/sqrt(in_features)) for both weight and bias.
    kw, kb = jax.random.split(key)
    bound = 1.0 / jnp.sqrt(jnp.float32(IN_FEATURES))
    weight = jax.random.uniform(
        kw, (OUT_FEATURES, IN_FEATURES), jnp.float32, -bound, bound
    )
    bias = jax.random.uniform(kb, (OUT_FEATURES,), jnp.float32, -bound, bound)
    return weight, bias


if __name__ == "__main__":
    key = jax.random.PRNGKey(0)
    kx, kp = jax.random.split(key)

    batch = 8
    x = jax.random.normal(kx, (batch, IN_FEATURES), jnp.float32)
    weight, bias = init_params(kp)

    out = simple_model_forward(x, weight, bias)
    out = jax.block_until_ready(out)

    # Reference check against plain JAX (same math as torch's x @ W^T + b).
    ref = x @ weight.T + bias
    assert out.shape == (batch, OUT_FEATURES)
    assert jnp.allclose(out, ref, atol=1e-5, rtol=1e-5)

    print("KERNEL_OK")
</pallas_src>

<mosaic_0001>
module attributes {stable_mosaic.version = 11 : i64} {
  func.func @linear_kernel(%arg0: i32, %arg1: memref<5x10xf32, #tpu.memory_space<vmem>>, %arg2: memref<5x1xf32, #tpu.memory_space<vmem>>, %arg3: memref<10x128xf32, #tpu.memory_space<vmem>>, %arg4: memref<5x128xf32, #tpu.memory_space<vmem>>) attributes {dimension_semantics = [#tpu.dimension_semantics<parallel>], iteration_bounds = array<i64: 1>, scalar_prefetch = 0 : i64, scratch_operands = 0 : i64, tpu.core_type = #tpu.core_type<tc>, window_params = [{pipeline_mode = #tpu.pipeline_mode<synchronous>, transform_indices = @transform_0, window_bounds = array<i64: 5, 10>}, {pipeline_mode = #tpu.pipeline_mode<synchronous>, transform_indices = @transform_1, window_bounds = array<i64: 5, 1>}, {transform_indices = @transform_2, window_bounds = array<i64: 10, 128>}, {transform_indices = @transform_3, window_bounds = array<i64: 5, 128>}]} {
    %c0 = arith.constant 0 : index
    %c0_0 = arith.constant 0 : index
    %0 = vector.load %arg1[%c0, %c0_0] : memref<5x10xf32, #tpu.memory_space<vmem>>, vector<5x10xf32>
    %c0_1 = arith.constant 0 : index
    %c0_2 = arith.constant 0 : index
    %1 = vector.load %arg3[%c0_1, %c0_2] : memref<10x128xf32, #tpu.memory_space<vmem>>, vector<10x128xf32>
    %cst = arith.constant dense<0.000000e+00> : vector<5x128xf32>
    %2 = tpu.matmul %0, %1, %cst {dimension_numbers = #tpu.dot_dimension_numbers<[1], [0], [0], [1], [0, 0, 1, 1], [], []>, precision = #tpu.contract_precision<fp32>} : vector<5x10xf32>, vector<10x128xf32>, vector<5x128xf32> -> vector<5x128xf32>
    %c0_3 = arith.constant 0 : index
    %c0_4 = arith.constant 0 : index
    %3 = vector.load %arg2[%c0_3, %c0_4] : memref<5x1xf32, #tpu.memory_space<vmem>>, vector<5x1xf32>
    %4 = vector.broadcast %3 : vector<5x1xf32> to vector<5x128xf32>
    %5 = arith.addf %2, %4 : vector<5x128xf32>
    %c0_5 = arith.constant 0 : index
    %c0_6 = arith.constant 0 : index
    %6 = vector.load %arg4[%c0_5, %c0_6] : memref<5x128xf32, #tpu.memory_space<vmem>>, vector<5x128xf32>
    tpu.vector_store %arg4[%c0_5, %c0_6], %5 {strides = array<i32>} : memref<5x128xf32, #tpu.memory_space<vmem>>, vector<5x128xf32>,
    return
  }
  func.func @transform_0(%arg0: i32) -> (i32, i32) {
    %c0_i32 = arith.constant 0 : i32
    %c0_i32_0 = arith.constant 0 : i32
    %c0_i32_1 = arith.constant 0 : i32
    return %c0_i32, %c0_i32_0 : i32, i32
  }
  func.func @transform_1(%arg0: i32) -> (i32, i32) {
    %c0_i32 = arith.constant 0 : i32
    %c0_i32_0 = arith.constant 0 : i32
    %c0_i32_1 = arith.constant 0 : i32
    return %c0_i32, %c0_i32_0 : i32, i32
  }
  func.func @transform_2(%arg0: i32) -> (i32, i32) {
    %c0_i32 = arith.constant 0 : i32
    %c0_i32_0 = arith.constant 0 : i32
    return %c0_i32, %arg0 : i32, i32
  }
  func.func @transform_3(%arg0: i32) -> (i32, i32) {
    %c0_i32 = arith.constant 0 : i32
    %c0_i32_0 = arith.constant 0 : i32
    return %c0_i32, %arg0 : i32, i32
  }
}

</mosaic_0001>

<bundles_post_ra>
// kernel: simple_model_forward.1
= control target key start
LH: loop header
LB: loop body
LE: loop exit
PB: predicated region body
PF: predicated region fallthrough
CT: control target
= control target key end

     0   :  { %vm27_vm0 = vcmask 1041408   ;;  %vm23_vm1 = vcmask 80896   ;;  %v559_v0 = vmov 0.0   ;;  %vm560_vm2 = vmmov 0   ;;  %s603_s2 = inlined_call_operand.vmem [shape: f32[10,128], index: 2, kind: input, shape index: {}]   ;;  %s604_s0 = inlined_call_operand.vmem [shape: f32[5,10], index: 0, kind: input, shape index: {}]   ;;  %s605_s1 = inlined_call_operand.vmem [shape: f32[5,1], index: 1, kind: input, shape index: {}]   ;;  %s606_s3 = inlined_call_operand.vmem [shape: f32[5,128], index: 3, kind: output, shape index: {}]  }
   0x1   :  { %513 = vmatprep.subr.mxu0 %v559_v0  ;;  %v16_v1 = vld [vmem:[%s603_s2 + $0x8] sm:$0x3]  ;;  %v15_v2 = vld [vmem:[%s603_s2] sm:$0xff]  ;;  %517 = vmatprep.mubr.msk.f32.mxu0 %vm560_vm2, %v559_v0  ;;  %v561_v10 = vmov 0  }
   0x2   :  { %v14_v3 = vld [vmem:[%s604_s0] sm:$0x1f]  ;;  %v29_v4 = vsel %vm27_vm0, %v16_v1, 0  ;;  %v63_v5 = vand.u32 4294901760, %v15_v2  ;;  %520 = vmatprep.subr.mxu1 %v559_v0  ;;  %524 = vmatprep.mubr.msk.f32.mxu1 %vm560_vm2, %v559_v0 }
   0x3   :  { %v25_v6 = vsel %vm23_vm1, %v14_v3, 0  ;;  %v17_v7 = vld [vmem:[%s605_s1] sm:$0x1f]  ;;  %v60_v8 = vand.u32 4294901760, %v29_v4  ;;  %558 = vset.pattern.permute.xlu0 %v561_v10 }
   0x4   :  { %v98_v9 = vand.u32 4294901760, %v25_v6  ;;  %v145_v11 = vsub.f32 %v15_v2, %v63_v5  ;;  %20 = vperm.xlu0 %558, %v17_v7  }
   0x5   :  { %514 = vmatpush3.msra.mxu0 %v60_v8  ;;  %v138_v13 = vsub.f32 %v29_v4, %v60_v8 }
   0x6   :  { %v99_v12 = vsub.f32 %v25_v6, %v98_v9  ;;  %515 = vmatprep.subr.mxu0 %v559_v0  ;;  %v146_v14 = vand.u32 4294901760, %v145_v11 }
   0x7   :  { %516 = vmatpush3.msra.mxu0 %v63_v5  ;;  %v139_v16 = vand.u32 4294901760, %v138_v13 }
   0x8   :  { %v100_v15 = vand.u32 4294901760, %v99_v12  ;;  %527 = vmatprep.subr.mxu0 %v559_v0  ;;  %v147_v17 = vsub.f32 %v145_v11, %v146_v14 }
   0x9   :  { %v140_v19 = vsub.f32 %v138_v13, %v139_v16 }
   0xa   :  { %v101_v18 = vsub.f32 %v99_v12, %v100_v15  ;;  %v148_v22 = vand.u32 4294901760, %v147_v17 }
   0xb   :  { %v141_v21 = vand.u32 4294901760, %v140_v19 }
   0xc   :  { %v102_v20 = vand.u32 4294901760, %v101_v18 }
   0xd   :  { %521 = vmatpush3.msra.mxu1 %v141_v21 }
   0xe   :  { %518 = vmatmul.mubr.f32.vlgmr.msra.gmra.mxu0 %v102_v20  ;;  %522 = vmatprep.subr.mxu1 %v559_v0 }
   0xf   :  { %528 = vmatpush3.msra.mxu0 %v138_v13  ;;  %523 = vmatpush3.msra.mxu1 %v148_v22 }
  0x10   :  { %529 = vmatprep.subr.mxu0 %v559_v0  ;;  %525 = vmatmul.mubr.f32.vlgmr.msra.gmra.mxu1 %v98_v9 }
  0x11   :  { %530 = vmatpush3.msra.mxu0 %v145_v11  ;;  %531 = vmatprep.mubr.msk.f32.mxu0 %vm560_vm2, %v559_v0 }
  0x12   :  { %534 = vmatprep.subr.mxu1 %v559_v0  ;;  %532 = vmatmul.mubr.f32.vlgmr.msra.gmra.mxu0 %v99_v12 }
  0x13   :  { %535 = vmatpush3.msra.mxu1 %v60_v8  ;;  %541 = vmatprep.subr.mxu0 %v559_v0 }
  0x14   :  { %536 = vmatprep.subr.mxu1 %v559_v0  ;;  %542 = vmatpush3.msra.mxu0 %v139_v16 }
  0x15   :  { %537 = vmatpush3.msra.mxu1 %v63_v5  ;;  %538 = vmatprep.mubr.msk.f32.mxu1 %vm560_vm2, %v559_v0 }
  0x16   :  { %543 = vmatprep.subr.mxu0 %v559_v0  ;;  %539 = vmatmul.mubr.f32.vlgmr.msra.gmra.mxu1 %v100_v15 }
  0x17   :  { %544 = vmatpush3.msra.mxu0 %v146_v14  ;;  %545 = vmatprep.mubr.msk.f32.mxu0 %vm560_vm2, %v559_v0 }
  0x18   :  { %548 = vmatprep.subr.mxu1 %v559_v0  ;;  %546 = vmatmul.mubr.f32.vlgmr.msra.gmra.mxu0 %v98_v9 }
  0x19   :  { %549 = vmatpush3.msra.mxu1 %v60_v8  ;;  %552 = vmatprep.mubr.msk.f32.mxu1 %vm560_vm2, %v559_v0 }
  0x1a   :  { %550 = vmatprep.subr.mxu1 %v559_v0 }
  0x1b   :  { %551 = vmatpush3.msra.mxu1 %v63_v5 }
  0x1c   :  { %553 = vmatmul.mubr.f32.vlgmr.msra.gmra.mxu1 %v98_v9 }
  0x7f   :  { %v21_v23 = vpop.permute.xlu0 %20 }
  0xce   :  { %v104_v24 = vpop.f32.mrf.mxu0 }
  0xcf   :  { %v105_v25 = vadd.f32 %v104_v24, %v21_v23 }
  0xd0   :  { %v519_v26 = vpop.f32.mrf.mxu0  ;;  %v185_v27 = vpop.f32.mrf.mxu1 }
  0xd1   :  { %v186_v28 = vadd.f32 %v185_v27, %v105_v25 }
  0xd2   :  { %v261_v29 = vpop.f32.mrf.mxu0  ;;  %v526_v30 = vpop.f32.mrf.mxu1 }
  0xd3   :  { %v262_v31 = vadd.f32 %v261_v29, %v186_v28 }
  0xd4   :  { %v533_v32 = vpop.f32.mrf.mxu0 }
  0xd6   :  { %v336_v33 = vpop.f32.mrf.mxu1 }
  0xd7   :  { %v337_v34 = vadd.f32 %v336_v33, %v262_v31 }
  0xd8   :  { %v413_v35 = vpop.f32.mrf.mxu0  ;;  %v540_v36 = vpop.f32.mrf.mxu1 }
  0xd9   :  { %v414_v37 = vadd.f32 %v413_v35, %v337_v34 }
  0xda   :  { %v547_v38 = vpop.f32.mrf.mxu0 }
  0xdc   :  { %v486_v39 = vpop.f32.mrf.mxu1 }
  0xdd   :  { %v487_v40 = vadd.f32 %v486_v39, %v414_v37 }
  0xde   :  { %v554_v41 = vpop.f32.mrf.mxu1 }
  0xdf   :  { %490 = vst [vmem:[%s606_s3] sm:$0x1f] %v487_v40 }

</bundles_post_ra>
